<compile_context>
chip_gen: v5e
topology: v5e:2x2
jax: 0.10.0
libtpu: 0.0.40
codegen_flags: <defaults>
</compile_context>

<pallas_src>
import jax
import jax.numpy as jnp
from jax import lax
from jax.experimental import pallas as pl
from jax.experimental.pallas import tpu as pltpu


# ---------------------------------------------------------------------------
# helpers
# ---------------------------------------------------------------------------
def _round_up(v: int, mult: int) -> int:
    return ((v + mult - 1) // mult) * mult


# Operands + output under this many bytes -> single full-array VMEM block
# (launch/DMA-overhead-bound regime; tiling adds nothing there).
_FAST_PATH_BYTES = 1 << 20


def _choose_tiles(M: int, N: int, K: int):
    # All tiles are multiples of 128 so both operand orders (x@A and A^T-contracted)
    # are (8,128)-legal. Budget is conservative: ~2.5 MiB double-buffered working
    # set, leaving ample headroom under v7x's 64 MiB physical / 32 MiB scoped VMEM.
    tm = min(256, _round_up(M, 128))
    tn = min(256, _round_up(N, 128))
    tk = min(512, _round_up(K, 128))
    return tm, tn, tk


def _cost(M, N, K, in_itemsize, out_itemsize):
    return pl.CostEstimate(
        flops=2 * M * N * K,
        transcendentals=0,
        bytes_accessed=(M * K + K * N) * in_itemsize + M * N * out_itemsize,
    )


# ---------------------------------------------------------------------------
# Pallas kernels
# ---------------------------------------------------------------------------
def _attr_single_kernel(x_ref, a_ref, o_ref):
    # out = x @ A
    o_ref[...] = jnp.dot(
        x_ref[...], a_ref[...], preferred_element_type=jnp.float32
    ).astype(o_ref.dtype)


def _inst_single_kernel(a_ref, x_ref, o_ref):
    # out = A.T @ x, expressed as a contraction over dim 0 of both operands
    # (no explicit XLU transpose).
    o_ref[...] = lax.dot_general(
        a_ref[...], x_ref[...],
        dimension_numbers=(((0,), (0,)), ((), ())),
        preferred_element_type=jnp.float32,
    ).astype(o_ref.dtype)


def _attr_tiled_kernel(x_ref, a_ref, o_ref, acc_ref):
    @pl.when(pl.program_id(2) == 0)
    def _init():
        acc_ref[...] = jnp.zeros_like(acc_ref)

    acc_ref[...] += jnp.dot(
        x_ref[...], a_ref[...], preferred_element_type=jnp.float32
    )

    @pl.when(pl.program_id(2) == pl.num_programs(2) - 1)
    def _fin():
        o_ref[...] = acc_ref[...].astype(o_ref.dtype)


def _inst_tiled_kernel(a_ref, x_ref, o_ref, acc_ref):
    @pl.when(pl.program_id(2) == 0)
    def _init():
        acc_ref[...] = jnp.zeros_like(acc_ref)

    acc_ref[...] += lax.dot_general(
        a_ref[...], x_ref[...],
        dimension_numbers=(((0,), (0,)), ((), ())),
        preferred_element_type=jnp.float32,
    )

    @pl.when(pl.program_id(2) == pl.num_programs(2) - 1)
    def _fin():
        o_ref[...] = acc_ref[...].astype(o_ref.dtype)


# ---------------------------------------------------------------------------
# matmul dispatchers (fast single-block path vs. tiled pipelined path)
# ---------------------------------------------------------------------------
def _attribute_matmul(x, A, compute_dtype=None, out_dtype=None):
    # out = x @ A : (M, K) @ (K, N) -> (M, N)
    if out_dtype is None:
        out_dtype = x.dtype
    if compute_dtype is not None:
        x = x.astype(compute_dtype)
        A = A.astype(compute_dtype)
    M, K = x.shape
    K2, N = A.shape
    assert K == K2
    in_isz = jnp.dtype(x.dtype).itemsize
    out_isz = jnp.dtype(out_dtype).itemsize
    total_bytes = (M * K + K * N) * in_isz + M * N * out_isz

    if total_bytes <= _FAST_PATH_BYTES:
        return pl.pallas_call(
            _attr_single_kernel,
            out_shape=jax.ShapeDtypeStruct((M, N), out_dtype),
            in_specs=[pl.BlockSpec(memory_space=pltpu.VMEM),
                      pl.BlockSpec(memory_space=pltpu.VMEM)],
            out_specs=pl.BlockSpec(memory_space=pltpu.VMEM),
            cost_estimate=_cost(M, N, K, in_isz, out_isz),
        )(x, A)

    tm, tn, tk = _choose_tiles(M, N, K)
    Mp, Np, Kp = _round_up(M, tm), _round_up(N, tn), _round_up(K, tk)
    xp = x if (Mp == M and Kp == K) else jnp.pad(x, ((0, Mp - M), (0, Kp - K)))
    Ap = A if (Kp == K and Np == N) else jnp.pad(A, ((0, Kp - K), (0, Np - N)))

    out = pl.pallas_call(
        _attr_tiled_kernel,
        out_shape=jax.ShapeDtypeStruct((Mp, Np), out_dtype),
        grid_spec=pltpu.PrefetchScalarGridSpec(
            num_scalar_prefetch=0,
            grid=(Mp // tm, Np // tn, Kp // tk),
            in_specs=[
                pl.BlockSpec((tm, tk), lambda i, j, k: (i, k)),   # x tile
                pl.BlockSpec((tk, tn), lambda i, j, k: (k, j)),   # A tile (indep. of i)
            ],
            out_specs=pl.BlockSpec((tm, tn), lambda i, j, k: (i, j)),
            scratch_shapes=[pltpu.VMEM((tm, tn), jnp.float32)],
        ),
        compiler_params=pltpu.CompilerParams(
            dimension_semantics=("parallel", "parallel", "arbitrary"),
            vmem_limit_bytes=32 * 1024 * 1024,
        ),
        cost_estimate=_cost(M, N, K, in_isz, out_isz),
    )(xp, Ap)
    return out[:M, :N] if (Mp != M or Np != N) else out


def _instance_matmul(x, A, compute_dtype=None, out_dtype=None):
    # out = A.T @ x : A (K, Mo), x (K, N) -> (Mo, N); contraction over K = b.
    if out_dtype is None:
        out_dtype = x.dtype
    if compute_dtype is not None:
        x = x.astype(compute_dtype)
        A = A.astype(compute_dtype)
    K, N = x.shape
    K2, Mo = A.shape
    assert K == K2
    in_isz = jnp.dtype(x.dtype).itemsize
    out_isz = jnp.dtype(out_dtype).itemsize
    total_bytes = (K * N + K * Mo) * in_isz + Mo * N * out_isz

    if total_bytes <= _FAST_PATH_BYTES:
        # TODO(synk): for b <= 32 a VPU broadcast-MAC variant would free the MXU;
        # at these sizes the call is dispatch-bound either way so MXU is kept.
        return pl.pallas_call(
            _inst_single_kernel,
            out_shape=jax.ShapeDtypeStruct((Mo, N), out_dtype),
            in_specs=[pl.BlockSpec(memory_space=pltpu.VMEM),
                      pl.BlockSpec(memory_space=pltpu.VMEM)],
            out_specs=pl.BlockSpec(memory_space=pltpu.VMEM),
            cost_estimate=_cost(Mo, N, K, in_isz, out_isz),
        )(A, x)

    tm, tn, tk = _choose_tiles(Mo, N, K)
    Mp, Np, Kp = _round_up(Mo, tm), _round_up(N, tn), _round_up(K, tk)
    Ap = A if (Kp == K and Mp == Mo) else jnp.pad(A, ((0, Kp - K), (0, Mp - Mo)))
    xp = x if (Kp == K and Np == N) else jnp.pad(x, ((0, Kp - K), (0, Np - N)))

    out = pl.pallas_call(
        _inst_tiled_kernel,
        out_shape=jax.ShapeDtypeStruct((Mp, Np), out_dtype),
        grid_spec=pltpu.PrefetchScalarGridSpec(
            num_scalar_prefetch=0,
            grid=(Mp // tm, Np // tn, Kp // tk),
            in_specs=[
                pl.BlockSpec((tk, tm), lambda i, j, k: (k, i)),   # A tile
                pl.BlockSpec((tk, tn), lambda i, j, k: (k, j)),   # x tile
            ],
            out_specs=pl.BlockSpec((tm, tn), lambda i, j, k: (i, j)),
            scratch_shapes=[pltpu.VMEM((tm, tn), jnp.float32)],
        ),
        compiler_params=pltpu.CompilerParams(
            dimension_semantics=("parallel", "parallel", "arbitrary"),
            vmem_limit_bytes=32 * 1024 * 1024,
        ),
        cost_estimate=_cost(Mo, N, K, in_isz, out_isz),
    )(Ap, xp)
    return out[:Mo, :N] if (Mp != Mo or Np != N) else out


# ---------------------------------------------------------------------------
# Python wrapper mirroring interdependence.forward semantics
# ---------------------------------------------------------------------------
class InterdependencePallas:
    _INSTANCE_TYPES = ("row", "left", "instance", "instance_interdependence")
    _ATTRIBUTE_TYPES = ("column", "right", "attribute", "attribute_interdependence")

    def __init__(self, b: int, m: int, interdependence_type: str = "attribute",
                 require_data: bool = True, require_parameters: bool = False,
                 A: jnp.ndarray = None, compute_dtype=None, out_dtype=None):
        if interdependence_type not in self._INSTANCE_TYPES + self._ATTRIBUTE_TYPES:
            raise ValueError(f"Invalid interdependence type: {interdependence_type}")
        self.b = b
        self.m = m
        self.interdependence_type = interdependence_type
        self.require_data = require_data
        self.require_parameters = require_parameters
        self.A = A                       # synthetic, deterministic "calculate_A" result
        # compute_dtype: optional bf16 cast for the MXU (f32 accumulation kept).
        # out_dtype: explicit output dtype; defaults to the original x dtype.
        self.compute_dtype = compute_dtype
        self.out_dtype = out_dtype

    def calculate_b_prime(self, b=None):
        return b if b is not None else self.b

    def calculate_m_prime(self, m=None):
        return m if m is not None else self.m

    def calculate_A(self, x=None, w=None):
        # Base class is abstract; a fixed synthetic matrix (set at init) stands in.
        # TODO(synk): subclass-specific calculate_A logic is not defined in the base module.
        return self.A

    def forward(self, x: jnp.ndarray = None, w: jnp.ndarray = None,
                kappa_x: jnp.ndarray = None):
        if self.require_data:
            assert x is not None and x.ndim == 2
        if self.require_parameters:
            assert w is not None and w.ndim == 2
        data_x = kappa_x if kappa_x is not None else x
        out_dtype = self.out_dtype if self.out_dtype is not None else data_x.dtype

        if self.interdependence_type in self._INSTANCE_TYPES:
            A = self.calculate_A(x.T, w)
            assert A is not None and A.shape[0] == data_x.shape[0]
            return _instance_matmul(data_x, A,
                                    compute_dtype=self.compute_dtype,
                                    out_dtype=out_dtype)
        elif self.interdependence_type in self._ATTRIBUTE_TYPES:
            A = self.calculate_A(x, w)
            assert A is not None and A.shape[0] == data_x.shape[1]
            return _attribute_matmul(data_x, A,
                                     compute_dtype=self.compute_dtype,
                                     out_dtype=out_dtype)
        else:
            raise ValueError(f"Invalid interdependence type: {self.interdependence_type}")


# ---------------------------------------------------------------------------
# Demo / correctness check
# ---------------------------------------------------------------------------
if __name__ == "__main__":
    key = jax.random.PRNGKey(0)
    k1, k2, k3, k4, k5, k6 = jax.random.split(key, 6)

    # --- small shapes (module demo scale): single-block VMEM fast path ---
    b, m = 8, 128
    x = jax.random.normal(k1, (b, m), dtype=jnp.float32)
    A_attr = jax.random.normal(k2, (m, m), dtype=jnp.float32) * 0.05
    A_inst = jax.random.normal(k3, (b, b), dtype=jnp.float32) * 0.05

    attr_mod = InterdependencePallas(b, m, "attribute", A=A_attr)
    out_attr = attr_mod.forward(x=x)
    jax.block_until_ready(out_attr)
    assert out_attr.shape == (b, m)
    assert jnp.allclose(out_attr, x @ A_attr, atol=1e-4, rtol=1e-4)

    inst_mod = InterdependencePallas(b, m, "instance", A=A_inst)
    out_inst = inst_mod.forward(x=x)
    jax.block_until_ready(out_inst)
    assert out_inst.shape == (b, m)
    assert jnp.allclose(out_inst, A_inst.T @ x, atol=1e-4, rtol=1e-4)

    # --- moderate shapes: tiled (M, N, K) grid, f32 accumulator, pipelined DMA ---
    b2, m2 = 256, 1024
    x2 = jax.random.normal(k4, (b2, m2), dtype=jnp.float32)
    A2_attr = jax.random.normal(k5, (m2, m2), dtype=jnp.float32) * 0.02
    A2_inst = jax.random.normal(k6, (b2, b2), dtype=jnp.float32) * 0.02

    attr_mod2 = InterdependencePallas(b2, m2, "attribute", A=A2_attr)
    out_attr2 = attr_mod2.forward(x=x2)
    jax.block_until_ready(out_attr2)
    assert out_attr2.shape == (b2, m2)
    assert jnp.allclose(out_attr2, x2 @ A2_attr, atol=1e-2, rtol=1e-2)

    inst_mod2 = InterdependencePallas(b2, m2, "instance", A=A2_inst)
    out_inst2 = inst_mod2.forward(x=x2)
    jax.block_until_ready(out_inst2)
    assert out_inst2.shape == (b2, m2)
    assert jnp.allclose(out_inst2, A2_inst.T @ x2, atol=1e-2, rtol=1e-2)

    # --- bf16 compute path (bf16 MXU inputs, f32 accumulation, f32 output) ---
    attr_bf16 = InterdependencePallas(b2, m2, "attribute", A=A2_attr,
                                      compute_dtype=jnp.bfloat16,
                                      out_dtype=jnp.float32)
    out_bf16 = attr_bf16.forward(x=x2)
    jax.block_until_ready(out_bf16)
    assert out_bf16.shape == (b2, m2)
    assert jnp.allclose(out_bf16, x2 @ A2_attr, atol=0.1, rtol=0.1)

    print("KERNEL_OK")
</pallas_src>

<mosaic_0001>
module attributes {stable_mosaic.version = 11 : i64} {
  func.func @_attr_single_kernel(%arg0: memref<8x128xf32, #tpu.memory_space<vmem>>, %arg1: memref<128x128xf32, #tpu.memory_space<vmem>>, %arg2: memref<8x128xf32, #tpu.memory_space<vmem>>) attributes {dimension_semantics = [], scalar_prefetch = 0 : i64, scratch_operands = 0 : i64, tpu.core_type = #tpu.core_type<tc>} {
    %c0 = arith.constant 0 : index
    %c0_0 = arith.constant 0 : index
    %0 = vector.load %arg0[%c0, %c0_0] : memref<8x128xf32, #tpu.memory_space<vmem>>, vector<8x128xf32>
    %c0_1 = arith.constant 0 : index
    %c0_2 = arith.constant 0 : index
    %1 = vector.load %arg1[%c0_1, %c0_2] : memref<128x128xf32, #tpu.memory_space<vmem>>, vector<128x128xf32>
    %cst = arith.constant dense<0.000000e+00> : vector<8x128xf32>
    %2 = tpu.matmul %0, %1, %cst {dimension_numbers = #tpu.dot_dimension_numbers<[1], [0], [0], [1], [0, 0, 1, 1], [], []>} : vector<8x128xf32>, vector<128x128xf32>, vector<8x128xf32> -> vector<8x128xf32>
    %c0_3 = arith.constant 0 : index
    %c0_4 = arith.constant 0 : index
    %3 = vector.load %arg2[%c0_3, %c0_4] : memref<8x128xf32, #tpu.memory_space<vmem>>, vector<8x128xf32>
    tpu.vector_store %arg2[%c0_3, %c0_4], %2 {strides = array<i32>} : memref<8x128xf32, #tpu.memory_space<vmem>>, vector<8x128xf32>,
    return
  }
}

</mosaic_0001>

<bundles_post_ra>
// kernel: tpu_custom_call.1
= control target key start
LH: loop header
LB: loop body
LE: loop exit
PB: predicated region body
PF: predicated region fallthrough
CT: control target
= control target key end

     0   :  { %7 = vsyncpa [#allocation3], 0  ;;  %s210_s0 = inlined_call_operand.hbm [shape: f32[8,128], index: 0, kind: input, shape index: {}]   ;;  %s211_s1 = inlined_call_operand.hbm [shape: f32[128,128], index: 1, kind: input, shape index: {}]   ;;  %s212_s2 = inlined_call_operand.hbm [shape: f32[8,128], index: 2, kind: output, shape index: {}]  }
   0x1   :  { %8 = vsyncpa [#allocation6], 0 }
   0x2   :  { %9 = vsyncpa [#allocation4], 0  ;;  %s15_s11 = sshll.u32 %s210_s0, 4  ;;  %s181_s12 = smov [#allocation2]   ;;  %s16_s11 = int_to_ptr.hbm [resolvable:$true] %s15_s11 }
   0x3   :  { %s17_s13 = sshll.u32 %s181_s12, 4  ;;  %s25_s16 = sshll.u32 %s211_s1, 4  ;;  %s18_s13 = int_to_ptr.vmem [resolvable:$true] %s17_s13  ;;  %s26_s16 = int_to_ptr.hbm [resolvable:$true] %s25_s16 }
   0x4   :  { %20 = dma.hbm_to_vmem [thread:$0]  %s16_s11, 128, %s18_s13, [#allocation3]  }
   0x5   :  { %s182_s17 = smov [#allocation5]   ;;  %s183_s19 = smov 128  }
   0x6   :  { %s27_s18 = sshll.u32 %s182_s17, 4  ;;  %s184_s20 = smov 8   ;;  %s28_s18 = int_to_ptr.vmem [resolvable:$true] %s27_s18 }
   0x7   :  { %33 = dma.hbm_to_vmem [thread:$0]  %s26_s16, 2048, %s28_s18, [#allocation6], %s183_s19, %s183_s19, %s184_s20  }
   0x8   :  { %175 = dma.done.wait [#allocation3], 128  }
   0x9   :  { %176 = vsyncadd [#allocation3], 4294967168 }
   0xa   :  { %177 = dma.done.wait [#allocation6], 2048  }
   0xb   :  { %178 = vsyncadd [#allocation6], 4294965248  ;;  %v58_v0 = vld [vmem:[#allocation5 + $0x78] sm:$0xff]  ;;  %v57_v1 = vld [vmem:[#allocation5 + $0x70] sm:$0xff]  ;;  %s185_s0 = smov [#allocation7]   ;;  %s87_s23 = sshll.u32 %s212_s2, 4  ;;  %s88_s23 = int_to_ptr.hbm [resolvable:$true] %s87_s23 }
   0xc   :  { %59 = vmatpush.msra.mxu0 %v58_v0  ;;  %v56_v2 = vld [vmem:[#allocation5 + $0x68] sm:$0xff]  ;;  %v55_v3 = vld [vmem:[#allocation5 + $0x60] sm:$0xff]  ;;  %v54_v4 = vld [vmem:[#allocation5 + $0x58] sm:$0xff]  ;;  %s85_s1 = sshll.u32 %s185_s0, 4  ;;  %s86_s1 = int_to_ptr.vmem [resolvable:$true] %s85_s1 }
   0xd   :  { %v53_v5 = vld [vmem:[#allocation5 + $0x50] sm:$0xff]  ;;  %v52_v6 = vld [vmem:[#allocation5 + $0x48] sm:$0xff]  ;;  %v51_v7 = vld [vmem:[#allocation5 + $0x40] sm:$0xff] }
   0xe   :  { %60 = vmatpush.msra.mxu0 %v57_v1  ;;  %v50_v8 = vld [vmem:[#allocation5 + $0x38] sm:$0xff]  ;;  %v49_v9 = vld [vmem:[#allocation5 + $0x30] sm:$0xff]  ;;  %v48_v10 = vld [vmem:[#allocation5 + $0x28] sm:$0xff] }
   0xf   :  { %v47_v11 = vld [vmem:[#allocation5 + $0x20] sm:$0xff]  ;;  %v46_v12 = vld [vmem:[#allocation5 + $0x18] sm:$0xff]  ;;  %v45_v13 = vld [vmem:[#allocation5 + $0x10] sm:$0xff] }
  0x10   :  { %61 = vmatpush.msra.mxu0 %v56_v2  ;;  %v44_v14 = vld [vmem:[#allocation5 + $0x8] sm:$0xff]  ;;  %v43_v15 = vld [vmem:[#allocation5] sm:$0xff]  ;;  %v42_v16 = vld [vmem:[#allocation2] sm:$0xff] }
  0x12   :  { %62 = vmatpush.msra.mxu0 %v55_v3 }
  0x14   :  { %63 = vmatpush.msra.mxu0 %v54_v4 }
  0x16   :  { %64 = vmatpush.msra.mxu0 %v53_v5 }
  0x18   :  { %65 = vmatpush.msra.mxu0 %v52_v6 }
  0x1a   :  { %66 = vmatpush.msra.mxu0 %v51_v7 }
  0x1c   :  { %67 = vmatpush.msra.mxu0 %v50_v8 }
  0x1e   :  { %68 = vmatpush.msra.mxu0 %v49_v9 }
  0x20   :  { %69 = vmatpush.msra.mxu0 %v48_v10 }
  0x22   :  { %70 = vmatpush.msra.mxu0 %v47_v11 }
  0x24   :  { %71 = vmatpush.msra.mxu0 %v46_v12 }
  0x26   :  { %72 = vmatpush.msra.mxu0 %v45_v13 }
  0x28   :  { %73 = vmatpush.msra.mxu0 %v44_v14 }
  0x2a   :  { %74 = vmatpush.msra.mxu0 %v43_v15 }
  0x2b   :  { %75 = vmatmul.f32.vlgmr.msra.gmra.mxu0 %v42_v16 }
  0xa8   :  { %v76_v17 = vpop.f32.mrf.mxu0 }
  0xa9   :  { %79 = vst [vmem:[#allocation7] sm:$0xff] %v76_v17 }
  0xaa   :  { %90 = dma.vmem_to_hbm [thread:$0]  %s86_s1, 128, %s88_s23, [#allocation4]  }
  0xab   :  { %179 = dma.done.wait [#allocation4], 128  }
  0xac   :  { %180 = vsyncadd [#allocation4], 4294967168 }
  0xad   :  { %95 = vsyncpa [#allocation3], 1 }
  0xae   :  { %96 = vsyncpa [#allocation6], 1 }
  0xaf   :  { %97 = vsyncpa [#allocation4], 1 }

</bundles_post_ra>
